<compile_context>
chip_gen: v7x
topology: tpu7x:2x2x1
jax: 0.10.0
libtpu: 0.0.40
codegen_flags: <defaults>
</compile_context>

<pallas_src>
import jax
import jax.numpy as jnp
from jax.experimental import pallas as pl
from jax.experimental.pallas import tpu as pltpu

HIDDEN = 256


def _round_up(x, m):
    return ((x + m - 1) // m) * m


def dueling_dqn_kernel(x_ref, w1_ref, b1_ref, w2_ref, b2_ref,
                       wh_ref, bh_ref, out_ref):
    # x_ref: (TB, Din) bf16; weights bf16; biases f32; out_ref: (TB, 128) f32.
    x = x_ref[...]

    # fc1 + relu (f32 accumulate, bf16 operands for the next MXU pass)
    h1 = jnp.dot(x, w1_ref[...], preferred_element_type=jnp.float32) + b1_ref[...]
    h1 = jnp.maximum(h1, 0.0).astype(w2_ref.dtype)

    # fc2 + relu
    h2 = jnp.dot(h1, w2_ref[...], preferred_element_type=jnp.float32) + b2_ref[...]
    h2 = jnp.maximum(h2, 0.0).astype(wh_ref.dtype)

    # Fused V|A head, lane-dense (TB, 128) output; padded columns are zero.
    out_ref[...] = (jnp.dot(h2, wh_ref[...], preferred_element_type=jnp.float32)
                    + bh_ref[...])


def prepare_params(params, *, compute_dtype=jnp.bfloat16):
    """One-time parameter preparation (hoisted out of the forward pass).

    Fuses the V and A heads into a single lane-dense (H, 128) weight, zero-pads
    the extra columns, and pre-casts matmul operands to bf16 (biases stay f32).
    """
    n_actions = params["wa"].shape[1]
    n_head = 1 + n_actions
    head_cols = _round_up(max(n_head, 128), 128)

    wh = jnp.concatenate([params["wv"], params["wa"]], axis=1)      # (H, 1+A)
    bh = jnp.concatenate([params["bv"], params["ba"]], axis=1)      # (1, 1+A)
    wh = jnp.pad(wh, ((0, 0), (0, head_cols - n_head)))
    bh = jnp.pad(bh, ((0, 0), (0, head_cols - n_head)))

    prepared = dict(
        w1=params["w1"].astype(compute_dtype),
        b1=params["b1"].astype(jnp.float32),
        w2=params["w2"].astype(compute_dtype),
        b2=params["b2"].astype(jnp.float32),
        wh=wh.astype(compute_dtype),
        bh=bh.astype(jnp.float32),
    )
    meta = dict(n_actions=n_actions, head_cols=head_cols,
                compute_dtype=compute_dtype)
    return prepared, meta


def _vmem_estimate_bytes(TB, Din, H, head_cols):
    per_step = (TB * Din * 2) * 2            # x tile (bf16) x 2 pipeline buffers
    per_step += (TB * head_cols * 4) * 2     # out tile (f32) x 2 pipeline buffers
    per_step += 2 * TB * H * 4               # h1 / h2 f32 temporaries
    weights = (Din * H + H * H + H * head_cols) * 2  # bf16, single-buffered
    weights += (2 * H + head_cols) * 4               # f32 biases
    return per_step + weights


def dueling_dqn_forward(x, prepared, meta, *, tile_b=1024,
                        core_parallel=False, return_fused=False):
    """x: (B, input_dims) f32. prepared/meta from prepare_params().

    Returns (V, A) in float32 (matching the PyTorch module), or — with
    return_fused=True — the padded lane-dense (B_pad, 128) slab so downstream
    consumers can avoid an extra HBM round trip.
    """
    B, Din = x.shape
    H = prepared["w1"].shape[1]
    head_cols = meta["head_cols"]
    n_actions = meta["n_actions"]
    compute_dtype = meta["compute_dtype"]

    # --- Batch tile: multiple of 16 (bf16 sublane packing), VMEM-budgeted ---
    TB = min(tile_b, _round_up(B, 16))
    TB = _round_up(TB, 16)
    vmem_budget = 48 * 2**20                 # safe under v7x's 64 MiB physical
    while TB > 16 and _vmem_estimate_bytes(TB, Din, H, head_cols) > vmem_budget:
        TB = _round_up(TB // 2, 16)
    B_pad = _round_up(B, TB)

    x_p = jnp.pad(x, ((0, B_pad - B), (0, 0))).astype(compute_dtype)

    grid = (B_pad // TB,)
    const = lambda i: (0, 0)                 # weights/biases resident across tiles
    single = pl.Buffered(1)                  # constant blocks: no 2nd buffer

    vmem_need = _vmem_estimate_bytes(TB, Din, H, head_cols)
    vmem_limit = int(min(max(2 * vmem_need, 32 * 2**20), 56 * 2**20))

    flops = 2 * B_pad * (Din * H + H * H + H * head_cols)
    bytes_accessed = (B_pad * Din * 2 + B_pad * head_cols * 4
                      + (Din * H + H * H + H * head_cols) * 2
                      + (2 * H + head_cols) * 4)

    batch_sem = pltpu.CORE_PARALLEL if core_parallel else "parallel"

    out = pl.pallas_call(
        dueling_dqn_kernel,
        out_shape=jax.ShapeDtypeStruct((B_pad, head_cols), jnp.float32),
        grid=grid,
        in_specs=[
            pl.BlockSpec((TB, Din), lambda i: (i, 0)),                     # x
            pl.BlockSpec((Din, H), const, pipeline_mode=single),           # w1
            pl.BlockSpec((1, H), const, pipeline_mode=single),             # b1
            pl.BlockSpec((H, H), const, pipeline_mode=single),             # w2
            pl.BlockSpec((1, H), const, pipeline_mode=single),             # b2
            pl.BlockSpec((H, head_cols), const, pipeline_mode=single),     # wh
            pl.BlockSpec((1, head_cols), const, pipeline_mode=single),     # bh
        ],
        out_specs=pl.BlockSpec((TB, head_cols), lambda i: (i, 0)),
        compiler_params=pltpu.CompilerParams(
            dimension_semantics=(batch_sem,),
            vmem_limit_bytes=vmem_limit),
        cost_estimate=pl.CostEstimate(flops=flops, transcendentals=0,
                                      bytes_accessed=bytes_accessed),
    )(x_p, prepared["w1"], prepared["b1"], prepared["w2"], prepared["b2"],
      prepared["wh"], prepared["bh"])

    if return_fused:
        # Padded lane-dense slab: col 0 = V, cols 1..n_actions = A, rest zero.
        return out

    V = out[:B, 0:1]
    A = out[:B, 1:1 + n_actions]
    return V, A


def init_params(key, input_dims, n_actions, hidden=HIDDEN):
    """PyTorch-Linear-style init: U(-1/sqrt(fan_in), 1/sqrt(fan_in)).
    Weights stored pre-transposed as (in, out); biases as (1, out). f32."""
    ks = jax.random.split(key, 8)

    def linear(kw, kb, fan_in, fan_out):
        bound = 1.0 / jnp.sqrt(jnp.float32(fan_in))
        w = jax.random.uniform(kw, (fan_in, fan_out), jnp.float32, -bound, bound)
        b = jax.random.uniform(kb, (1, fan_out), jnp.float32, -bound, bound)
        return w, b

    w1, b1 = linear(ks[0], ks[1], input_dims, hidden)
    w2, b2 = linear(ks[2], ks[3], hidden, hidden)
    wv, bv = linear(ks[4], ks[5], hidden, 1)
    wa, ba = linear(ks[6], ks[7], hidden, n_actions)
    return dict(w1=w1, b1=b1, w2=w2, b2=b2, wv=wv, bv=bv, wa=wa, ba=ba)


def reference_forward(x, p, dtype=jnp.float32):
    """Pure-JAX reference with the same operand dtype / f32 accumulation."""
    w1 = p["w1"].astype(dtype); w2 = p["w2"].astype(dtype)
    wv = p["wv"].astype(dtype); wa = p["wa"].astype(dtype)
    xx = x.astype(dtype)
    h1 = jnp.maximum(jnp.dot(xx, w1, preferred_element_type=jnp.float32) + p["b1"], 0.0)
    h1 = h1.astype(dtype)
    h2 = jnp.maximum(jnp.dot(h1, w2, preferred_element_type=jnp.float32) + p["b2"], 0.0)
    h2 = h2.astype(dtype)
    V = jnp.dot(h2, wv, preferred_element_type=jnp.float32) + p["bv"]
    A = jnp.dot(h2, wa, preferred_element_type=jnp.float32) + p["ba"]
    return V, A


if __name__ == "__main__":
    key = jax.random.PRNGKey(0)
    k_x, k_p = jax.random.split(key)

    batch = 2
    input_dims = 8
    n_actions = 4

    x = jax.random.normal(k_x, (batch, input_dims), jnp.float32)
    params = init_params(k_p, input_dims, n_actions)

    # One-time param prep (fused head, padding, bf16 casts) outside forward.
    prepared, meta = prepare_params(params)

    V, A = dueling_dqn_forward(x, prepared, meta)
    V, A = jax.block_until_ready((V, A))

    assert V.shape == (batch, 1) and A.shape == (batch, n_actions)

    # Tight check vs a bf16-operand / f32-accumulate JAX reference.
    V_bf, A_bf = reference_forward(x, params, dtype=jnp.bfloat16)
    assert jnp.allclose(V, V_bf, atol=2e-3, rtol=2e-3)
    assert jnp.allclose(A, A_bf, atol=2e-3, rtol=2e-3)

    # Loose sanity check vs the full-f32 PyTorch-equivalent math.
    V_f32, A_f32 = reference_forward(x, params, dtype=jnp.float32)
    assert jnp.allclose(V, V_f32, atol=5e-2, rtol=5e-2)
    assert jnp.allclose(A, A_f32, atol=5e-2, rtol=5e-2)

    # Fused-slab path (no post-kernel slicing): check it agrees too.
    fused = jax.block_until_ready(
        dueling_dqn_forward(x, prepared, meta, return_fused=True))
    assert jnp.allclose(fused[:batch, 0:1], V)
    assert jnp.allclose(fused[:batch, 1:1 + n_actions], A)

    print("KERNEL_OK")
</pallas_src>

<mosaic_0001>
module attributes {stable_mosaic.version = 11 : i64} {
  func.func @dueling_dqn_kernel(%arg0: i32, %arg1: memref<16x8xbf16, #tpu.memory_space<vmem>>, %arg2: memref<8x256xbf16, #tpu.memory_space<vmem>>, %arg3: memref<1x256xf32, #tpu.memory_space<vmem>>, %arg4: memref<256x256xbf16, #tpu.memory_space<vmem>>, %arg5: memref<1x256xf32, #tpu.memory_space<vmem>>, %arg6: memref<256x128xbf16, #tpu.memory_space<vmem>>, %arg7: memref<1x128xf32, #tpu.memory_space<vmem>>, %arg8: memref<16x128xf32, #tpu.memory_space<vmem>>) attributes {dimension_semantics = [#tpu.dimension_semantics<parallel>], iteration_bounds = array<i64: 1>, scalar_prefetch = 0 : i64, scratch_operands = 0 : i64, tpu.core_type = #tpu.core_type<tc>, window_params = [{transform_indices = @transform_0, window_bounds = array<i64: 16, 8>}, {pipeline_mode = #tpu.pipeline_mode<synchronous>, transform_indices = @transform_1, window_bounds = array<i64: 8, 256>}, {pipeline_mode = #tpu.pipeline_mode<synchronous>, transform_indices = @transform_2, window_bounds = array<i64: 1, 256>}, {pipeline_mode = #tpu.pipeline_mode<synchronous>, transform_indices = @transform_3, window_bounds = array<i64: 256, 256>}, {pipeline_mode = #tpu.pipeline_mode<synchronous>, transform_indices = @transform_4, window_bounds = array<i64: 1, 256>}, {pipeline_mode = #tpu.pipeline_mode<synchronous>, transform_indices = @transform_5, window_bounds = array<i64: 256, 128>}, {pipeline_mode = #tpu.pipeline_mode<synchronous>, transform_indices = @transform_6, window_bounds = array<i64: 1, 128>}, {transform_indices = @transform_7, window_bounds = array<i64: 16, 128>}]} {
    %c0 = arith.constant 0 : index
    %c0_0 = arith.constant 0 : index
    %0 = vector.load %arg1[%c0, %c0_0] : memref<16x8xbf16, #tpu.memory_space<vmem>>, vector<16x8xbf16>
    %c0_1 = arith.constant 0 : index
    %c0_2 = arith.constant 0 : index
    %1 = vector.load %arg2[%c0_1, %c0_2] : memref<8x256xbf16, #tpu.memory_space<vmem>>, vector<8x256xbf16>
    %cst = arith.constant dense<0.000000e+00> : vector<16x256xf32>
    %2 = tpu.matmul %0, %1, %cst {dimension_numbers = #tpu.dot_dimension_numbers<[1], [0], [0], [1], [0, 0, 1, 1], [], []>} : vector<16x8xbf16>, vector<8x256xbf16>, vector<16x256xf32> -> vector<16x256xf32>
    %c0_3 = arith.constant 0 : index
    %c0_4 = arith.constant 0 : index
    %3 = vector.load %arg3[%c0_3, %c0_4] : memref<1x256xf32, #tpu.memory_space<vmem>>, vector<1x256xf32>
    %4 = vector.broadcast %3 : vector<1x256xf32> to vector<16x256xf32>
    %5 = arith.addf %2, %4 : vector<16x256xf32>
    %cst_5 = arith.constant 0.000000e+00 : f32
    %6 = vector.broadcast %cst_5 : f32 to vector<16x256xf32>
    %7 = arith.maximumf %5, %6 : vector<16x256xf32>
    %8 = arith.truncf %7 : vector<16x256xf32> to vector<16x256xbf16>
    %c0_6 = arith.constant 0 : index
    %c0_7 = arith.constant 0 : index
    %9 = vector.load %arg4[%c0_6, %c0_7] : memref<256x256xbf16, #tpu.memory_space<vmem>>, vector<256x256xbf16>
    %cst_8 = arith.constant dense<0.000000e+00> : vector<16x256xf32>
    %10 = tpu.matmul %8, %9, %cst_8 {dimension_numbers = #tpu.dot_dimension_numbers<[1], [0], [0], [1], [0, 0, 1, 1], [], []>} : vector<16x256xbf16>, vector<256x256xbf16>, vector<16x256xf32> -> vector<16x256xf32>
    %c0_9 = arith.constant 0 : index
    %c0_10 = arith.constant 0 : index
    %11 = vector.load %arg5[%c0_9, %c0_10] : memref<1x256xf32, #tpu.memory_space<vmem>>, vector<1x256xf32>
    %12 = vector.broadcast %11 : vector<1x256xf32> to vector<16x256xf32>
    %13 = arith.addf %10, %12 : vector<16x256xf32>
    %cst_11 = arith.constant 0.000000e+00 : f32
    %14 = vector.broadcast %cst_11 : f32 to vector<16x256xf32>
    %15 = arith.maximumf %13, %14 : vector<16x256xf32>
    %16 = arith.truncf %15 : vector<16x256xf32> to vector<16x256xbf16>
    %c0_12 = arith.constant 0 : index
    %c0_13 = arith.constant 0 : index
    %17 = vector.load %arg6[%c0_12, %c0_13] : memref<256x128xbf16, #tpu.memory_space<vmem>>, vector<256x128xbf16>
    %cst_14 = arith.constant dense<0.000000e+00> : vector<16x128xf32>
    %18 = tpu.matmul %16, %17, %cst_14 {dimension_numbers = #tpu.dot_dimension_numbers<[1], [0], [0], [1], [0, 0, 1, 1], [], []>} : vector<16x256xbf16>, vector<256x128xbf16>, vector<16x128xf32> -> vector<16x128xf32>
    %c0_15 = arith.constant 0 : index
    %c0_16 = arith.constant 0 : index
    %19 = vector.load %arg7[%c0_15, %c0_16] : memref<1x128xf32, #tpu.memory_space<vmem>>, vector<1x128xf32>
    %20 = vector.broadcast %19 : vector<1x128xf32> to vector<16x128xf32>
    %21 = arith.addf %18, %20 : vector<16x128xf32>
    %c0_17 = arith.constant 0 : index
    %c0_18 = arith.constant 0 : index
    %22 = vector.load %arg8[%c0_17, %c0_18] : memref<16x128xf32, #tpu.memory_space<vmem>>, vector<16x128xf32>
    tpu.vector_store %arg8[%c0_17, %c0_18], %21 {strides = array<i32>} : memref<16x128xf32, #tpu.memory_space<vmem>>, vector<16x128xf32>,
    return
  }
  func.func @transform_0(%arg0: i32) -> (i32, i32) {
    %c0_i32 = arith.constant 0 : i32
    %c0_i32_0 = arith.constant 0 : i32
    return %arg0, %c0_i32 : i32, i32
  }
  func.func @transform_1(%arg0: i32) -> (i32, i32) {
    %c0_i32 = arith.constant 0 : i32
    %c0_i32_0 = arith.constant 0 : i32
    %c0_i32_1 = arith.constant 0 : i32
    return %c0_i32, %c0_i32_0 : i32, i32
  }
  func.func @transform_2(%arg0: i32) -> (i32, i32) {
    %c0_i32 = arith.constant 0 : i32
    %c0_i32_0 = arith.constant 0 : i32
    %c0_i32_1 = arith.constant 0 : i32
    return %c0_i32, %c0_i32_0 : i32, i32
  }
  func.func @transform_3(%arg0: i32) -> (i32, i32) {
    %c0_i32 = arith.constant 0 : i32
    %c0_i32_0 = arith.constant 0 : i32
    %c0_i32_1 = arith.constant 0 : i32
    return %c0_i32, %c0_i32_0 : i32, i32
  }
  func.func @transform_4(%arg0: i32) -> (i32, i32) {
    %c0_i32 = arith.constant 0 : i32
    %c0_i32_0 = arith.constant 0 : i32
    %c0_i32_1 = arith.constant 0 : i32
    return %c0_i32, %c0_i32_0 : i32, i32
  }
  func.func @transform_5(%arg0: i32) -> (i32, i32) {
    %c0_i32 = arith.constant 0 : i32
    %c0_i32_0 = arith.constant 0 : i32
    %c0_i32_1 = arith.constant 0 : i32
    return %c0_i32, %c0_i32_0 : i32, i32
  }
  func.func @transform_6(%arg0: i32) -> (i32, i32) {
    %c0_i32 = arith.constant 0 : i32
    %c0_i32_0 = arith.constant 0 : i32
    %c0_i32_1 = arith.constant 0 : i32
    return %c0_i32, %c0_i32_0 : i32, i32
  }
  func.func @transform_7(%arg0: i32) -> (i32, i32) {
    %c0_i32 = arith.constant 0 : i32
    %c0_i32_0 = arith.constant 0 : i32
    return %arg0, %c0_i32 : i32, i32
  }
}

</mosaic_0001>

<bundles_post_ra>
// kernel: tpu_custom_call.1
= control target key start
LH: loop header
LB: loop body
LE: loop exit
PB: predicated region body
PF: predicated region fallthrough
CT: control target
= control target key end

     0   :  { %12 = vsyncpa [#allocation3], 0  ;;  %s918_s0 = inlined_call_operand.vmem [shape: bf16[16,8], index: 0, kind: input, shape index: {}]   ;;  %s919_s1 = inlined_call_operand.vmem [shape: bf16[8,256], index: 1, kind: input, shape index: {}]   ;;  %s920_s2 = inlined_call_operand.vmem [shape: f32[1,256], index: 2, kind: input, shape index: {}]   ;;  %s921_s3 = inlined_call_operand.hbm [shape: bf16[256,256], index: 3, kind: input, shape index: {}]   ;;  %s922_s4 = inlined_call_operand.vmem [shape: f32[1,256], index: 4, kind: input, shape index: {}]   ;;  %s923_s5 = inlined_call_operand.hbm [shape: bf16[256,128], index: 5, kind: input, shape index: {}]   ;;  %s924_s6 = inlined_call_operand.vmem [shape: f32[1,128], index: 6, kind: input, shape index: {}]   ;;  %s925_s7 = inlined_call_operand.hbm [shape: f32[16,128], index: 7, kind: output, shape index: {}]  }
   0x1   :  { %13 = vsyncpa [#allocation6], 0 }
   0x2   :  { %14 = vsyncpa [#allocation4], 0  ;;  %s813_s24 = smov [#allocation2]   ;;  %s741_s28 = scalar_lea.hbm %s921_s3, 4096 }
   0x3   :  { %s26_s25 = sshll.u32 %s813_s24, 4  ;;  %p742_p0 = scmp.ne.s32.totalorder %s921_s3, %s741_s28  ;;  %s27_s25 = int_to_ptr.vmem [resolvable:$true] %s26_s25 }
   0x4   :  { %p745_p1 = scmp.lt.u32.totalorder %s741_s28, %s921_s3 }
   0x6   :  { %p747_p2 = pnand %p745_p1, %p742_p0 }
   0x8   :  { %750 = shalt.err (!%p747_p2)
}
   0x9   :  { %s751_s10 = scalar_lea.vmem %s27_s25, 4096  ;;  %p756_p4 = scmp.lt.s32.totalorder %s27_s25, %s27_s25 }
   0xa   :  { %p752_p3 = scmp.ne.s32.totalorder %s27_s25, %s751_s10  ;;  %p757_p5 = scmp.lt.s32.totalorder %s751_s10, %s751_s10 }
   0xc   :  { %p758_p6 = por %p757_p5, %p756_p4 }
   0xe   :  { %p759_p7 = pnand %p758_p6, %p752_p3 }
  0x10   :  { %762 = shalt.err (!%p759_p7)
}
  0x11   :  { %s814_s11 = smov 128   ;;  %s815_s12 = smov 8  }
  0x12   :  { %32 = dma.hbm_to_vmem [thread:$0]  %s921_s3, 4096, %s27_s25, [#allocation3], %s814_s11, %s814_s11, %s815_s12  }
  0x13   :  { %s816_s15 = smov [#allocation5]   ;;  %s763_s19 = scalar_lea.hbm %s923_s5, 2048 }
  0x14   :  { %s40_s16 = sshll.u32 %s816_s15, 4  ;;  %p764_p8 = scmp.ne.s32.totalorder %s923_s5, %s763_s19  ;;  %s41_s16 = int_to_ptr.vmem [resolvable:$true] %s40_s16 }
  0x15   :  { %p767_p9 = scmp.lt.u32.totalorder %s763_s19, %s923_s5 }
  0x17   :  { %p769_p10 = pnand %p767_p9, %p764_p8 }
  0x19   :  { %772 = shalt.err (!%p769_p10)
}
  0x1a   :  { %s773_s24 = scalar_lea.vmem %s41_s16, 2048  ;;  %p778_p12 = scmp.lt.s32.totalorder %s41_s16, %s41_s16 }
  0x1b   :  { %p774_p11 = scmp.ne.s32.totalorder %s41_s16, %s773_s24  ;;  %p779_p13 = scmp.lt.s32.totalorder %s773_s24, %s773_s24 }
  0x1d   :  { %p780_p0 = por %p779_p13, %p778_p12 }
  0x1f   :  { %p781_p1 = pnand %p780_p0, %p774_p11 }
  0x21   :  { %784 = shalt.err (!%p781_p1)
}
  0x22   :  { %s817_s3 = smov 64   ;;  %s818_s25 = smov 4  }
  0x23   :  { %46 = dma.hbm_to_vmem [thread:$0]  %s923_s5, 2048, %s41_s16, [#allocation6], %s817_s3, %s817_s3, %s818_s25  }
  0x24   :  { %807 = dma.done.wait [#allocation3], 4096  }
  0x25   :  { %808 = vsyncadd [#allocation3], 4294963200 }
  0x26   :  { %809 = dma.done.wait [#allocation6], 2048  }
  0x27   :  { %810 = vsyncadd [#allocation6], 4294965248  ;;  %v819_v0 = vmov 0   ;;  %v58_v1 = vld [vmem:[%s919_s1] sm:$0xff]  ;;  %vm85_vm0 = vcmask 1043456   ;;  %vm81_vm1 = vcmask 64512   ;;  %v61_v49 = vlaneseq }
  0x28   :  { %124 = vmatprep.mubr.bf16.mxu0 %v819_v0  ;;  %v592_v2 = vcombine.high %v58_v1, %v58_v1  ;;  %v591_v3 = vcombine.low %v58_v1, %v58_v1  ;;  %v677_v4 = vld [vmem:[#allocation2 + $0x4] ss:$8 sps:$4 sm:$0xff]   ;;  %v679_v5 = vld [vmem:[#allocation2] ss:$8 sps:$4 sm:$0xff]   ;;  %v676_v7 = vld [vmem:[%s918_s0] sm:$0xff]   ;;  %s820_s10 = smov [#allocation7]  }
  0x29   :  { %v680_v8 = vld [vmem:[#allocation2 + $0x14] ss:$8 sps:$4 sm:$0xff]   ;;  %345 = vmatprep.subr.bf16.mxu1 %v677_v4  ;;  %v682_v9 = vld [vmem:[#allocation2 + $0x10] ss:$8 sps:$4 sm:$0xff]   ;;  %v683_v10 = vld [vmem:[#allocation2 + $0x24] ss:$8 sps:$4 sm:$0xff]  }
  0x2a   :  { %593 = vmatprep.subr.msk.bf16.mxu0 %vm85_vm0, %v592_v2  ;;  %v87_v6 = vsel %vm85_vm0, %v591_v3, 0  ;;  %346 = vmatpush1.bf16.msra.mxu1 %v679_v5  ;;  %v685_v11 = vld [vmem:[#allocation2 + $0x20] ss:$8 sps:$4 sm:$0xff]   ;;  %v686_v12 = vld [vmem:[#allocation2 + $0x34] ss:$8 sps:$4 sm:$0xff]   ;;  %v62_v50 = vshrl.u32 %v61_v49, 7 }
  0x2b   :  { %93 = vmatpush1.bf16.msra.mxu0 %v87_v6  ;;  %347 = vmatprep.subr.bf16.mxu1 %v680_v8  ;;  %v688_v13 = vld [vmem:[#allocation2 + $0x30] ss:$8 sps:$4 sm:$0xff]   ;;  %v689_v14 = vld [vmem:[#allocation2 + $0x44] ss:$8 sps:$4 sm:$0xff]   ;;  %v691_v15 = vld [vmem:[#allocation2 + $0x40] ss:$8 sps:$4 sm:$0xff]  }
  0x2c   :  { %v692_v16 = vld [vmem:[#allocation2 + $0x54] ss:$8 sps:$4 sm:$0xff]   ;;  %v694_v17 = vld [vmem:[#allocation2 + $0x50] ss:$8 sps:$4 sm:$0xff]   ;;  %v695_v18 = vld [vmem:[#allocation2 + $0x64] ss:$8 sps:$4 sm:$0xff]  }
  0x2d   :  { %v697_v19 = vld [vmem:[#allocation2 + $0x60] ss:$8 sps:$4 sm:$0xff]   ;;  %v698_v20 = vld [vmem:[#allocation2 + $0x74] ss:$8 sps:$4 sm:$0xff]   ;;  %v700_v21 = vld [vmem:[#allocation2 + $0x70] ss:$8 sps:$4 sm:$0xff]  }
  0x2e   :  { %594 = vmatmul.mubr.msk.bf16.vlgmr.msra.gmra.mrb[0].mxu0 %vm81_vm1, %v676_v7  ;;  %348 = vmatpush1.bf16.msra.mxu1 %v682_v9  ;;  %v701_v22 = vld [vmem:[#allocation2 + $0x84] ss:$8 sps:$4 sm:$0xff]   ;;  %v703_v23 = vld [vmem:[#allocation2 + $0x80] ss:$8 sps:$4 sm:$0xff]   ;;  %v704_v24 = vld [vmem:[#allocation2 + $0x94] ss:$8 sps:$4 sm:$0xff]  }
  0x2f   :  { %349 = vmatprep.subr.bf16.mxu1 %v683_v10  ;;  %v706_v25 = vld [vmem:[#allocation2 + $0x90] ss:$8 sps:$4 sm:$0xff]   ;;  %v707_v26 = vld [vmem:[#allocation2 + $0xa4] ss:$8 sps:$4 sm:$0xff]   ;;  %v709_v27 = vld [vmem:[#allocation2 + $0xa0] ss:$8 sps:$4 sm:$0xff]  }
  0x30   :  { %v710_v28 = vld [vmem:[#allocation2 + $0xb4] ss:$8 sps:$4 sm:$0xff]   ;;  %v712_v29 = vld [vmem:[#allocation2 + $0xb0] ss:$8 sps:$4 sm:$0xff]   ;;  %v713_v30 = vld [vmem:[#allocation2 + $0xc4] ss:$8 sps:$4 sm:$0xff]  }
  0x31   :  { %v715_v31 = vld [vmem:[#allocation2 + $0xc0] ss:$8 sps:$4 sm:$0xff]   ;;  %v716_v32 = vld [vmem:[#allocation2 + $0xd4] ss:$8 sps:$4 sm:$0xff]   ;;  %v718_v33 = vld [vmem:[#allocation2 + $0xd0] ss:$8 sps:$4 sm:$0xff]  }
  0x32   :  { %350 = vmatpush1.bf16.msra.mxu1 %v685_v11  ;;  %v719_v34 = vld [vmem:[#allocation2 + $0xe4] ss:$8 sps:$4 sm:$0xff]   ;;  %v721_v35 = vld [vmem:[#allocation2 + $0xe0] ss:$8 sps:$4 sm:$0xff]   ;;  %v722_v36 = vld [vmem:[#allocation2 + $0xf4] ss:$8 sps:$4 sm:$0xff]  }
  0x33   :  { %351 = vmatprep.subr.bf16.mxu1 %v686_v12  ;;  %v724_v37 = vld [vmem:[#allocation2 + $0xf0] ss:$8 sps:$4 sm:$0xff]   ;;  %v725_v38 = vld [vmem:[#allocation5 + $0x40] sm:$0xff]   ;;  %v727_v40 = vld [vmem:[#allocation5 + $0x48] sm:$0xff]   ;;  %v63_v51 = vsub.s32 0, %v62_v50  ;;  %v67_v53 = vsub.s32 1, %v62_v50 }
  0x34   :  { %v726_v39 = vld [vmem:[#allocation5] sm:$0xff]   ;;  %644 = vmatprep.subr.bf16.mxu0 %v725_v38  ;;  %v728_v41 = vld [vmem:[#allocation5 + $0x8] sm:$0xff]   ;;  %v729_v42 = vld [vmem:[#allocation5 + $0x50] sm:$0xff]   ;;  %s577_s13 = sshll.u32 %s820_s10, 4  ;;  %s578_s13 = int_to_ptr.vmem [resolvable:$true] %s577_s13 }
  0x35   :  { %645 = vmatpush3.bf16.msra.mxu0 %v726_v39  ;;  %v730_v43 = vld [vmem:[#allocation5 + $0x10] sm:$0xff]   ;;  %v731_v44 = vld [vmem:[#allocation5 + $0x58] sm:$0xff]   ;;  %v733_v46 = vld [vmem:[#allocation5 + $0x60] sm:$0xff]   ;;  %s785_s14 = scalar_lea.vmem %s578_s13, 256  ;;  %p790_p3 = scmp.lt.s32.totalorder %s578_s13, %s578_s13 }
  0x36   :  { %352 = vmatpush1.bf16.msra.mxu1 %v688_v13  ;;  %646 = vmatprep.subr.bf16.mxu0 %v727_v40  ;;  %v732_v45 = vld [vmem:[#allocation5 + $0x18] sm:$0xff]   ;;  %v734_v47 = vld [vmem:[#allocation5 + $0x20] sm:$0xff]   ;;  %v735_v48 = vld [vmem:[#allocation5 + $0x68] sm:$0xff]   ;;  %p786_p2 = scmp.ne.s32.totalorder %s578_s13, %s785_s14  ;;  %p791_p4 = scmp.lt.s32.totalorder %s785_s14, %s785_s14 }
  0x37   :  { %353 = vmatprep.subr.bf16.mxu1 %v689_v14  ;;  %v59_v52 = vld [vmem:[%s920_s2] sm:$0x3]  ;;  %v736_v6 = vld [vmem:[#allocation5 + $0x28] sm:$0xff]   ;;  %v737_v7 = vld [vmem:[#allocation5 + $0x70] sm:$0xff]  }
  0x38   :  { %v64_v54 = vrot.slane %v59_v52, %v63_v51  ;;  %v68_v55 = vrot.slane %v59_v52, %v67_v53  ;;  %v738_v8 = vld [vmem:[#allocation5 + $0x30] sm:$0xff]   ;;  %v739_v9 = vld [vmem:[#allocation5 + $0x78] sm:$0xff]   ;;  %p792_p5 = por %p791_p4, %p790_p3 }
  0x39   :  { %647 = vmatpush3.bf16.msra.mxu0 %v728_v41  ;;  %v740_v10 = vld [vmem:[#allocation5 + $0x38] sm:$0xff]  }
  0x3a   :  { %354 = vmatpush1.bf16.msra.mxu1 %v691_v15  ;;  %648 = vmatprep.subr.bf16.mxu0 %v729_v42  ;;  %v173_v11 = vld [vmem:[%s922_s4] sm:$0x3]  ;;  %p793_p6 = pnand %p792_p5, %p786_p2 }
  0x3b   :  { %355 = vmatprep.subr.bf16.mxu1 %v692_v16  ;;  %v178_v12 = vrot.slane %v173_v11, %v63_v51  ;;  %v182_v13 = vrot.slane %v173_v11, %v67_v53 }
  0x3d   :  { %649 = vmatpush3.bf16.msra.mxu0 %v730_v43 }
  0x3e   :  { %356 = vmatpush1.bf16.msra.mxu1 %v694_v17  ;;  %650 = vmatprep.subr.bf16.mxu0 %v731_v44 }
  0x3f   :  { %357 = vmatprep.subr.bf16.mxu1 %v695_v18 }
  0x41   :  { %651 = vmatpush3.bf16.msra.mxu0 %v732_v45 }
  0x42   :  { %358 = vmatpush1.bf16.msra.mxu1 %v697_v19  ;;  %652 = vmatprep.subr.bf16.mxu0 %v733_v46 }
  0x43   :  { %359 = vmatprep.subr.bf16.mxu1 %v698_v20 }
  0x45   :  { %653 = vmatpush3.bf16.msra.mxu0 %v734_v47 }
  0x46   :  { %360 = vmatpush1.bf16.msra.mxu1 %v700_v21  ;;  %654 = vmatprep.subr.bf16.mxu0 %v735_v48 }
  0x47   :  { %361 = vmatprep.subr.bf16.mxu1 %v701_v22 }
  0x49   :  { %655 = vmatpush3.bf16.msra.mxu0 %v736_v6 }
  0x4a   :  { %362 = vmatpush1.bf16.msra.mxu1 %v703_v23  ;;  %656 = vmatprep.subr.bf16.mxu0 %v737_v7 }
  0x4b   :  { %363 = vmatprep.subr.bf16.mxu1 %v704_v24 }
  0x4d   :  { %657 = vmatpush3.bf16.msra.mxu0 %v738_v8 }
  0x4e   :  { %364 = vmatpush1.bf16.msra.mxu1 %v706_v25  ;;  %658 = vmatprep.subr.bf16.mxu0 %v739_v9 }
  0x4f   :  { %365 = vmatprep.subr.bf16.mxu1 %v707_v26 }
  0x51   :  { %659 = vmatpush3.bf16.msra.mxu0 %v740_v10 }
  0x52   :  { %366 = vmatpush1.bf16.msra.mxu1 %v709_v27 }
  0x53   :  { %367 = vmatprep.subr.bf16.mxu1 %v710_v28 }
  0x56   :  { %368 = vmatpush1.bf16.msra.mxu1 %v712_v29  ;;  %v627_v29 = vld [vmem:[%s924_s6] ss:$0 sm:$0xff] }
  0x57   :  { %369 = vmatprep.subr.bf16.mxu1 %v713_v30 }
  0x5a   :  { %370 = vmatpush1.bf16.msra.mxu1 %v715_v31 }
  0x5b   :  { %371 = vmatprep.subr.bf16.mxu1 %v716_v32 }
  0x5e   :  { %372 = vmatpush1.bf16.msra.mxu1 %v718_v33 }
  0x5f   :  { %373 = vmatprep.subr.bf16.mxu1 %v719_v34 }
  0x62   :  { %374 = vmatpush1.bf16.msra.mxu1 %v721_v35 }
  0x63   :  { %375 = vmatprep.subr.bf16.mxu1 %v722_v36 }
  0x66   :  { %376 = vmatpush1.bf16.msra.mxu1 %v724_v37 }
 0x101   :  { %v126_v56 = vpop.f32.mrb[0].mxu0 }
 0x102   :  { %v127_v57 = vadd.f32 %v126_v56, %v64_v54  ;;  %v128_v58 = vpop.f32.mrb[1].mxu0 }
 0x103   :  { %v129_v59 = vadd.f32 %v128_v58, %v68_v55  ;;  %v130_v60 = vpop.f32.mrb[2].mxu0 }
 0x104   :  { %v131_v61 = vadd.f32 %v130_v60, %v64_v54  ;;  %v132_v62 = vpop.f32.mrb[3].mxu0  ;;  %v135_v0 = vmax.f32 %v127_v57, 0.0 }
 0x105   :  { %v133_v63 = vadd.f32 %v132_v62, %v68_v55  ;;  %v136_v2 = vmax.f32 %v129_v59, 0.0 }
 0x106   :  { %v137_v1 = vmax.f32 %v131_v61, 0.0 }
 0x107   :  { %v138_v3 = vmax.f32 %v133_v63, 0.0 }
 0x108   :  { %v139_v4 = vpack.c.bf16 %v137_v1, %v135_v0 }
 0x109   :  { %v140_v5 = vpack.c.bf16 %v138_v3, %v136_v2 }
 0x10b   :  { %377 = vmatprep.mubr.bf16.mxu1 %v140_v5 }
 0x10c   :  { %378 = vmatmul.mubr.bf16.vlgmr.msra.gmra.mrb[0].mxu1 %v139_v4 }
 0x1df   :  { %v379_v14 = vpop.f32.mrb[0].mxu1 }
 0x1e0   :  { %v380_v15 = vadd.f32 %v379_v14, %v178_v12  ;;  %v381_v16 = vpop.f32.mrb[1].mxu1 }
 0x1e1   :  { %v382_v17 = vadd.f32 %v381_v16, %v182_v13  ;;  %v383_v18 = vpop.f32.mrb[2].mxu1 }
 0x1e2   :  { %v384_v19 = vadd.f32 %v383_v18, %v178_v12  ;;  %v385_v20 = vpop.f32.mrb[3].mxu1  ;;  %v388_v22 = vmax.f32 %v380_v15, 0.0 }
 0x1e3   :  { %v386_v21 = vadd.f32 %v385_v20, %v182_v13  ;;  %v389_v24 = vmax.f32 %v382_v17, 0.0 }
 0x1e4   :  { %v390_v23 = vmax.f32 %v384_v19, 0.0 }
 0x1e5   :  { %v391_v25 = vmax.f32 %v386_v21, 0.0 }
 0x1e6   :  { %v392_v26 = vpack.c.bf16 %v390_v23, %v388_v22 }
 0x1e7   :  { %v393_v27 = vpack.c.bf16 %v391_v25, %v389_v24 }
 0x1e9   :  { %561 = vmatprep.mubr.bf16.mxu0 %v393_v27 }
 0x1ea   :  { %562 = vmatmul.mubr.bf16.vlgmr.msra.gmra.mrb[4].mxu0 %v392_v26 }
 0x2bd   :  { %v660_v28 = vpop.f32.mrb[4].mxu0 }
 0x2be   :  { %v661_v30 = vpop.f32.mrb[5].mxu0 }
 0x2bf   :  { %v662_v31 = vadd.f32 %v661_v30, %v660_v28  ;;  %v663_v32 = vpop.f32.mrb[6].mxu0 }
 0x2c0   :  { %v664_v33 = vpop.f32.mrb[7].mxu0 }
 0x2c1   :  { %v564_v34 = vadd.f32 %v662_v31, %v627_v29  ;;  %v665_v35 = vadd.f32 %v664_v33, %v663_v32 }
 0x2c3   :  { %570 = vst [vmem:[#allocation7] sm:$0xff] %v564_v34  ;;  %v567_v36 = vadd.f32 %v665_v35, %v627_v29 }
 0x2c5   :  { %571 = vst [vmem:[#allocation7 + $0x8] sm:$0xff] %v567_v36 }
 0x2c6   :  { %796 = shalt.err (!%p793_p6)
}
 0x2c7   :  { %s797_s16 = scalar_lea.hbm %s925_s7, 256 }
 0x2c8   :  { %p798_p7 = scmp.ne.s32.totalorder %s925_s7, %s797_s16  ;;  %p801_p8 = scmp.lt.u32.totalorder %s797_s16, %s925_s7 }
 0x2ca   :  { %p803_p9 = pnand %p801_p8, %p798_p7 }
 0x2cc   :  { %806 = shalt.err (!%p803_p9)
}
 0x2cd   :  { %583 = dma.vmem_to_hbm [thread:$0]  %s578_s13, 256, %s925_s7, [#allocation4], %s814_s11, %s814_s11, %s815_s12  }
 0x2ce   :  { %811 = dma.done.wait [#allocation4], 256  }
 0x2cf   :  { %812 = vsyncadd [#allocation4], 4294967040 }
 0x2d0   :  { %587 = vsyncpa [#allocation3], 1 }
 0x2d1   :  { %588 = vsyncpa [#allocation6], 1 }
 0x2d2   :  { %589 = vsyncpa [#allocation4], 1 }

</bundles_post_ra>
